<compile_context>
chip_gen: v6e
topology: v6e:2x2x1
jax: 0.10.0
libtpu: 0.0.40
codegen_flags: <defaults>
</compile_context>

<pallas_src>
import jax
import jax.numpy as jnp
from jax.experimental import pallas as pl
from jax.experimental.pallas import tpu as pltpu

_LANE = 128


def _round_up(x: int, m: int) -> int:
    return ((x + m - 1) // m) * m


def _round_down(x: int, m: int) -> int:
    return (x // m) * m


def _sublane_granularity(dtype) -> int:
    """Native packed-sublane granularity (8 for 32-bit, 16 for 16-bit, 32 for 8-bit)."""
    itemsize = jnp.dtype(dtype).itemsize
    if itemsize >= 4:
        return 8
    if itemsize == 2:
        return 16
    return 32


# ---------------------------------------------------------------------------
# Pallas kernel: identity copy of one tile (mem-bound).
# ---------------------------------------------------------------------------
def _copy_kernel(x_ref, o_ref):
    o_ref[...] = x_ref[...]


def _choose_blocks(rows: int, cols: int, itemsize: int, sub: int,
                   target_block_bytes: int, min_grid_steps: int):
    """Pick (block_rows, block_cols) within the VMEM budget, allowing the grid
    to overhang (boundary blocks are masked), and keeping >= min_grid_steps
    grid steps for large copies (megacore / v7x 2-TC sharding)."""
    row_granule = rows if rows <= sub else sub

    # ---- column block: full width if a single row-granule strip fits budget,
    # otherwise a lane-aligned tile (grid may overhang the last column block).
    if row_granule * cols * itemsize <= target_block_bytes:
        block_cols = cols
    else:
        block_cols = _round_down(target_block_bytes // (row_granule * itemsize), _LANE)
        block_cols = max(_LANE, min(block_cols, 8192))

    # ---- row block: as many sublane granules as fit the budget.
    if rows <= sub:
        block_rows = rows
    else:
        row_budget = max(1, target_block_bytes // (block_cols * itemsize))
        block_rows = min(_round_up(rows, sub),
                         max(sub, _round_down(row_budget, sub)))

    # ---- ensure >= min_grid_steps parallel steps for large copies (v7x 2 TCs).
    total_bytes = rows * cols * itemsize
    steps = pl.cdiv(rows, block_rows) * pl.cdiv(cols, block_cols)
    if total_bytes >= (4 << 20) and steps < min_grid_steps:
        if rows >= 2 * sub:
            block_rows = max(sub, _round_down(pl.cdiv(rows, min_grid_steps), sub))
        elif cols >= 2 * _LANE:
            block_cols = max(_LANE, _round_up(pl.cdiv(cols, min_grid_steps), _LANE))

    return block_rows, block_cols


def _materialized_copy_real(x: jnp.ndarray, *,
                            target_block_bytes: int = 6 * 1024 * 1024,
                            min_grid_steps: int = 2) -> jnp.ndarray:
    """Materialized copy of a real-valued array via a tiled Pallas kernel."""
    if x.ndim == 0 or x.size == 0:
        return x  # nothing worth a kernel launch
    x2 = x.reshape(1, -1) if x.ndim == 1 else x.reshape(-1, x.shape[-1])
    rows, cols = x2.shape
    itemsize = jnp.dtype(x2.dtype).itemsize
    sub = _sublane_granularity(x2.dtype)

    block_rows, block_cols = _choose_blocks(rows, cols, itemsize, sub,
                                            target_block_bytes, min_grid_steps)
    grid = (pl.cdiv(rows, block_rows), pl.cdiv(cols, block_cols))

    out2 = pl.pallas_call(
        _copy_kernel,
        out_shape=jax.ShapeDtypeStruct((rows, cols), x2.dtype),
        grid=grid,
        in_specs=[pl.BlockSpec((block_rows, block_cols), lambda i, j: (i, j))],
        out_specs=pl.BlockSpec((block_rows, block_cols), lambda i, j: (i, j)),
        compiler_params=pltpu.CompilerParams(
            dimension_semantics=("parallel", "parallel"),
            vmem_limit_bytes=32 * 1024 * 1024),
        cost_estimate=pl.CostEstimate(
            flops=0,
            transcendentals=0,
            bytes_accessed=2 * rows * cols * itemsize),
    )(x2)

    return out2.reshape(x.shape)


def _materialized_copy(x: jnp.ndarray, **kwargs) -> jnp.ndarray:
    """Materialized copy of an arbitrary-shape array (kernel-backed)."""
    if jnp.issubdtype(x.dtype, jnp.complexfloating):
        # Complex dtypes are not routed through Mosaic: copy the real and
        # imaginary planes through the kernel and recombine (value-exact).
        re = _materialized_copy_real(jnp.real(x), **kwargs)
        im = _materialized_copy_real(jnp.imag(x), **kwargs)
        return jax.lax.complex(re, im).astype(x.dtype)
    return _materialized_copy_real(x, **kwargs)


# ---------------------------------------------------------------------------
# JAX/Pallas port of the base quantum `Operation` module.
# ---------------------------------------------------------------------------
class OperationPallas:
    """JAX port of deepquantum.photonic.operation.Operation."""

    def __init__(self, name=None, nmode: int = 1, wires=None, cutoff: int = 2):
        self.name = name
        self.nmode = nmode
        self.wires = wires
        self.cutoff = cutoff
        self.npara = 0  # base class has no parameters

    def init_para(self):
        # Base class: no parameters.
        pass

    def tensor_rep(self, x: jnp.ndarray, materialize: bool = False) -> jnp.ndarray:
        """Tensor representation of the state: [-1] + [cutoff]*nmode.

        Default path is a metadata-only reshape (zero cost, identical to the
        PyTorch forward).  `materialize=True` forces a physical copy via the
        tiled Pallas kernel.
        """
        shape = (-1,) + (self.cutoff,) * self.nmode
        if not materialize:
            return x.reshape(shape)
        return _materialized_copy(x).reshape(shape)

    def forward(self, x: jnp.ndarray) -> jnp.ndarray:
        return self.tensor_rep(x)

    __call__ = forward

    # ---- index-checking utilities (host-side, no kernel needed) ----
    def _convert_indices(self, indices):
        if isinstance(indices, int):
            indices = [indices]
        assert isinstance(indices, list), 'Invalid input type'
        assert all(isinstance(i, int) for i in indices), 'Invalid input type'
        if len(indices) > 0:
            assert min(indices) > -1 and max(indices) < self.nmode, 'Invalid input'
        assert len(set(indices)) == len(indices), 'Invalid input'
        return indices

    def _check_minmax(self, minmax):
        assert isinstance(minmax, list)
        assert len(minmax) == 2
        assert all(isinstance(i, int) for i in minmax)
        assert -1 < minmax[0] <= minmax[1] < self.nmode


if __name__ == "__main__":
    key = jax.random.PRNGKey(0)

    # --- Test 1: small state, default (free) path + materialized kernel path.
    nmode, cutoff, batch = 3, 4, 2
    dim = cutoff ** nmode  # 64
    x = jax.random.normal(key, (batch, dim), dtype=jnp.float32)

    op = OperationPallas(name="op", nmode=nmode, wires=list(range(nmode)), cutoff=cutoff)

    out_free = jax.block_until_ready(op(x))                               # reshape only
    out_kern = jax.block_until_ready(op.tensor_rep(x, materialize=True))  # Pallas copy
    ref = x.reshape((-1,) + (cutoff,) * nmode)

    assert out_free.shape == (batch,) + (cutoff,) * nmode
    assert out_kern.shape == ref.shape and out_kern.dtype == x.dtype
    assert jnp.array_equal(out_free, ref)
    assert jnp.array_equal(out_kern, ref)

    # Complex amplitudes: free path AND materialized (real/imag kernel copies).
    xc = (x + 1j * x[:, ::-1]).astype(jnp.complex64)
    out_c_free = jax.block_until_ready(op(xc))
    out_c_kern = jax.block_until_ready(op.tensor_rep(xc, materialize=True))
    ref_c = xc.reshape((-1,) + (cutoff,) * nmode)
    assert jnp.array_equal(out_c_free, ref_c)
    assert out_c_kern.dtype == xc.dtype and jnp.array_equal(out_c_kern, ref_c)

    # --- Test 2: multi-step grid along the lane dimension (small VMEM budget).
    x2 = jax.random.normal(jax.random.PRNGKey(1), (8, 4096), dtype=jnp.float32)
    y2 = jax.block_until_ready(_materialized_copy(x2, target_block_bytes=8 * 1024))
    assert jnp.array_equal(y2, x2)

    # --- Test 3: non-lane-aligned state (cutoff=3, nmode=7 -> 2187) with both
    # row and column overhang blocks (masked boundary writes, no padding pass).
    nmode3, cutoff3 = 7, 3
    dim3 = cutoff3 ** nmode3  # 2187 (not a multiple of 128)
    x3 = jax.random.normal(jax.random.PRNGKey(2), (37, dim3), dtype=jnp.float32)
    y3 = jax.block_until_ready(_materialized_copy(x3, target_block_bytes=4 * 1024))
    assert jnp.array_equal(y3, x3)
    op3 = OperationPallas(name="op3", nmode=nmode3, wires=list(range(nmode3)), cutoff=cutoff3)
    x3b = jax.random.normal(jax.random.PRNGKey(3), (5, dim3), dtype=jnp.float32)
    y3b = jax.block_until_ready(op3.tensor_rep(x3b, materialize=True))
    assert jnp.array_equal(y3b, x3b.reshape((-1,) + (cutoff3,) * nmode3))

    # --- Test 4: bf16 exercises the 16-row sublane granularity + row overhang.
    x4 = jax.random.normal(jax.random.PRNGKey(4), (20, 512), dtype=jnp.bfloat16)
    y4 = jax.block_until_ready(_materialized_copy(x4, target_block_bytes=2 * 1024))
    assert jnp.array_equal(y4, x4)

    # --- Test 5: >= 4 MiB copy triggers the min-grid-steps split (>= 2 parallel
    # steps so v7x can use both TensorCores) at the default block budget.
    x5 = jax.random.normal(jax.random.PRNGKey(5), (16, 65536), dtype=jnp.float32)
    y5 = jax.block_until_ready(_materialized_copy(x5))
    assert jnp.array_equal(y5, x5)

    print("KERNEL_OK")
</pallas_src>

<mosaic_0001>
module attributes {stable_mosaic.version = 11 : i64} {
  func.func @_copy_kernel(%arg0: i32, %arg1: i32, %arg2: memref<2x64xf32, #tpu.memory_space<vmem>>, %arg3: memref<2x64xf32, #tpu.memory_space<vmem>>) attributes {dimension_semantics = [#tpu.dimension_semantics<parallel>, #tpu.dimension_semantics<parallel>], iteration_bounds = array<i64: 1, 1>, scalar_prefetch = 0 : i64, scratch_operands = 0 : i64, tpu.core_type = #tpu.core_type<tc>, window_params = [{transform_indices = @transform_0, window_bounds = array<i64: 2, 64>}, {transform_indices = @transform_1, window_bounds = array<i64: 2, 64>}]} {
    %c0 = arith.constant 0 : index
    %c0_0 = arith.constant 0 : index
    %0 = vector.load %arg2[%c0, %c0_0] : memref<2x64xf32, #tpu.memory_space<vmem>>, vector<2x64xf32>
    %c0_1 = arith.constant 0 : index
    %c0_2 = arith.constant 0 : index
    %1 = vector.load %arg3[%c0_1, %c0_2] : memref<2x64xf32, #tpu.memory_space<vmem>>, vector<2x64xf32>
    tpu.vector_store %arg3[%c0_1, %c0_2], %0 {strides = array<i32>} : memref<2x64xf32, #tpu.memory_space<vmem>>, vector<2x64xf32>,
    return
  }
  func.func @transform_0(%arg0: i32, %arg1: i32) -> (i32, i32) {
    %c0_i32 = arith.constant 0 : i32
    return %arg0, %arg1 : i32, i32
  }
  func.func @transform_1(%arg0: i32, %arg1: i32) -> (i32, i32) {
    %c0_i32 = arith.constant 0 : i32
    return %arg0, %arg1 : i32, i32
  }
}

</mosaic_0001>

<bundles_post_ra>
// kernel: tpu_custom_call.1
= control target key start
LH: loop header
LB: loop body
LE: loop exit
PB: predicated region body
PF: predicated region fallthrough
CT: control target
= control target key end

     0   :  { %6 = vsyncpa [#allocation3], 0  ;;  %s103_s0 = inlined_call_operand.hbm [shape: f32[2,64], index: 0, kind: input, shape index: {}]   ;;  %s104_s1 = inlined_call_operand.hbm [shape: f32[2,64], index: 1, kind: output, shape index: {}]  }
   0x1   :  { %7 = vsyncpa [#allocation4], 0  ;;  %s85_s6 = smov [#allocation2]  }
   0x2   :  { %s14_s7 = sshll.u32 %s85_s6, 4  ;;  %s15_s7 = int_to_ptr.vmem [resolvable:$true] %s14_s7 }
   0x3   :  { %s49_s8 = scalar_lea.vmem %s15_s7, 32  ;;  %p54_p1 = scmp.lt.s32.totalorder %s15_s7, %s15_s7 }
   0x4   :  { %p50_p0 = scmp.ne.s32.totalorder %s15_s7, %s49_s8  ;;  %p55_p2 = scmp.lt.s32.totalorder %s49_s8, %s49_s8 }
   0x6   :  { %p56_p3 = por %p55_p2, %p54_p1 }
   0x8   :  { %p57_p4 = pnand %p56_p3, %p50_p0 }
   0xa   :  { %60 = shalt.err (!%p57_p4)
}
   0xb   :  { %17 = dma.hbm_to_vmem [thread:$0]  %s103_s0, 32, %s15_s7, [#allocation3]  }
   0xc   :  { %81 = dma.done.wait [#allocation3], 32  }
   0xd   :  { %82 = vsyncadd [#allocation3], 4294967264  ;;  %s86_s11 = smov [#allocation5]   ;;  %vm22_vm0 = vcmask 517120   ;;  %v21_v0 = vld [vmem:[#allocation2] sm:$0x3] }
   0xe   :  { %s30_s12 = sshll.u32 %s86_s11, 4  ;;  %23 = vst.msk [vmem:[#allocation5] sm:$0x3] %vm22_vm0, %v21_v0  ;;  %s31_s12 = int_to_ptr.vmem [resolvable:$true] %s30_s12 }
   0xf   :  { %s61_s13 = scalar_lea.vmem %s31_s12, 32  ;;  %p66_p6 = scmp.lt.s32.totalorder %s31_s12, %s31_s12 }
  0x10   :  { %p62_p5 = scmp.ne.s32.totalorder %s31_s12, %s61_s13  ;;  %p67_p7 = scmp.lt.s32.totalorder %s61_s13, %s61_s13 }
  0x12   :  { %p68_p8 = por %p67_p7, %p66_p6 }
  0x14   :  { %p69_p9 = pnand %p68_p8, %p62_p5 }
  0x16   :  { %72 = shalt.err (!%p69_p9)
}
  0x17   :  { %33 = dma.vmem_to_hbm [thread:$0]  %s31_s12, 32, %s104_s1, [#allocation4]  }
  0x18   :  { %83 = dma.done.wait [#allocation4], 32  }
  0x19   :  { %84 = vsyncadd [#allocation4], 4294967264 }
  0x1a   :  { %37 = vsyncpa [#allocation3], 1 }
  0x1b   :  { %38 = vsyncpa [#allocation4], 1 }

</bundles_post_ra>
